<compile_context>
chip_gen: v5e
topology: v5e:2x2
jax: 0.10.0
libtpu: 0.0.40
codegen_flags: <defaults>
</compile_context>

<pallas_src>
import functools

import jax
import jax.numpy as jnp
from jax.experimental import pallas as pl
from jax.experimental.pallas import tpu as pltpu

LANE = 128
MAX_TILE_ROWS = 2048  # (2048, 128) f32 tile = 1 MiB per pipeline buffer.


def _ceil_div(a, b):
    return -(-a // b)


def _num_core_splits():
    """2-way grid split only on generations with 2 TensorCores/chip (v7x)."""
    try:
        kind = jax.devices()[0].device_kind.lower()
    except Exception:
        return 1
    return 2 if ("v7" in kind or "7x" in kind) else 1


def _tversky_sums_kernel(x_ref, t_ref, tp_ref, sx_ref, st_ref,
                         *, rows, tile_r, bps, needs_mask):
    """Per-split lane-shaped partial sums of x*t, x, t over (tile_r, 128) tiles."""
    j = pl.program_id(1)

    # Output blocks are resident across the reduction axis j (out index map
    # ignores j), so they double as the accumulators: init at j == 0,
    # accumulate every step, Pallas writes them back once per split.
    @pl.when(j == 0)
    def _init():
        tp_ref[...] = jnp.zeros_like(tp_ref)
        sx_ref[...] = jnp.zeros_like(sx_ref)
        st_ref[...] = jnp.zeros_like(st_ref)

    # Cast after the VMEM load so sub-f32 inputs stream at native width.
    x = x_ref[...].astype(jnp.float32)
    t = t_ref[...].astype(jnp.float32)

    if needs_mask:
        # Ragged tail (and any clamped/phantom tile) handled in-kernel:
        # zero out rows whose global row index is past the real data.
        s = pl.program_id(0)
        row0 = (s * bps + j) * tile_r
        rid = row0 + jax.lax.broadcasted_iota(jnp.int32, (tile_r, LANE), 0)
        valid = rid < rows
        x = jnp.where(valid, x, 0.0)
        t = jnp.where(valid, t, 0.0)

    # Hot path: elementwise product + cross-vreg (sublane) adds into the
    # lane-shaped accumulators; the 128-wide cross-lane reduce happens once,
    # outside the kernel.
    tp_ref[...] += jnp.sum(x * t, axis=0).reshape(1, 1, LANE)
    sx_ref[...] += jnp.sum(x, axis=0).reshape(1, 1, LANE)
    st_ref[...] += jnp.sum(t, axis=0).reshape(1, 1, LANE)


def tversky_loss(inputs, targets, alpha=0.5, beta=0.5, smooth=1.0):
    """Pallas equivalent of TverskyLoss(alpha, beta)(inputs, targets, smooth)."""
    x = jnp.reshape(inputs, (-1,))
    t = jnp.reshape(targets, (-1,))
    # Keep native float dtypes (bf16/f16 halve HBM traffic); only promote
    # non-float (bool/int) operands so block tiling stays simple.
    if not jnp.issubdtype(x.dtype, jnp.floating):
        x = x.astype(jnp.float32)
    if not jnp.issubdtype(t.dtype, jnp.floating):
        t = t.astype(jnp.float32)

    n = x.shape[0]
    if n == 0:
        return jnp.float32(0.0)

    # Lane-dense 2D view. Only pads (a copy) when n % 128 != 0; typical NCHW
    # segmentation shapes reshape for free.  Padded zeros add nothing to sums.
    n_lane = _ceil_div(n, LANE) * LANE
    if n_lane != n:
        x = jnp.pad(x, (0, n_lane - n))
        t = jnp.pad(t, (0, n_lane - n))
    rows = n_lane // LANE
    x2 = x.reshape(rows, LANE)
    t2 = t.reshape(rows, LANE)

    if rows <= MAX_TILE_ROWS:
        tile_r = rows                 # full-extent block: no (8,128) divisibility needed
        blocks_total = 1
    else:
        tile_r = MAX_TILE_ROWS        # multiple of 8 (and of 16/32 for packed dtypes)
        blocks_total = _ceil_div(rows, tile_r)

    num_splits = _num_core_splits() if blocks_total >= 2 else 1
    bps = _ceil_div(blocks_total, num_splits)          # blocks per split
    covered_rows = num_splits * bps * tile_r
    needs_mask = covered_rows != rows
    has_phantom = num_splits * bps != blocks_total     # extra (fully masked) tiles

    if has_phantom:
        # Clamp phantom tile indices onto the last real tile; their rows are
        # fully masked out inside the kernel, so they contribute nothing.
        def in_map(s, j):
            return (jnp.minimum(s * bps + j, blocks_total - 1), 0)
    else:
        def in_map(s, j):
            return (s * bps + j, 0)

    out_map = lambda s, j: (s, 0, 0)
    part_shape = jax.ShapeDtypeStruct((num_splits, 1, LANE), jnp.float32)
    part_spec = pl.BlockSpec((1, 1, LANE), out_map)

    kernel = functools.partial(
        _tversky_sums_kernel,
        rows=rows, tile_r=tile_r, bps=bps, needs_mask=needs_mask)

    bytes_streamed = rows * LANE * (x2.dtype.itemsize + t2.dtype.itemsize)

    tp_parts, sx_parts, st_parts = pl.pallas_call(
        kernel,
        out_shape=(part_shape, part_shape, part_shape),
        grid_spec=pltpu.PrefetchScalarGridSpec(
            num_scalar_prefetch=0,
            grid=(num_splits, bps),
            in_specs=[
                pl.BlockSpec((tile_r, LANE), in_map),
                pl.BlockSpec((tile_r, LANE), in_map),
            ],
            out_specs=(part_spec, part_spec, part_spec),
        ),
        compiler_params=pltpu.CompilerParams(
            dimension_semantics=("parallel", "arbitrary"),
        ),
        cost_estimate=pl.CostEstimate(
            flops=4 * n,
            transcendentals=0,
            bytes_accessed=int(bytes_streamed + 3 * num_splits * LANE * 4),
        ),
    )(x2, t2)

    # Tiny XLA epilogue: cross-lane + cross-split reduce, then Tversky formula.
    true_pos = jnp.sum(tp_parts)
    sum_x = jnp.sum(sx_parts)
    sum_t = jnp.sum(st_parts)
    false_neg = sum_t - true_pos       # sum((1 - x) * t)
    false_pos = sum_x - true_pos       # sum(x * (1 - t))
    tversky = (true_pos + smooth) / (
        true_pos + alpha * false_neg + beta * false_pos + smooth)
    return 1.0 - tversky


def tversky_loss_ref(inputs, targets, alpha=0.5, beta=0.5, smooth=1.0):
    x = jnp.reshape(inputs, (-1,)).astype(jnp.float32)
    t = jnp.reshape(targets, (-1,)).astype(jnp.float32)
    tp = jnp.sum(x * t)
    fn = jnp.sum((1.0 - x) * t)
    fp = jnp.sum(x * (1.0 - t))
    return 1.0 - (tp + smooth) / (tp + alpha * fn + beta * fp + smooth)


if __name__ == "__main__":
    key = jax.random.PRNGKey(0)
    k1, k2 = jax.random.split(key)

    # NCHW-like shapes (batch=2, channels=4, spatial=16x16), as a segmentation
    # loss would see: sigmoid probabilities vs. binary targets.
    shape = (2, 4, 16, 16)
    inputs = jax.nn.sigmoid(jax.random.normal(k1, shape, dtype=jnp.float32))
    targets = (jax.random.uniform(k2, shape) > 0.5).astype(jnp.float32)

    out = tversky_loss(inputs, targets, alpha=0.5, beta=0.5, smooth=1.0)
    out = jax.block_until_ready(out)

    ref = tversky_loss_ref(inputs, targets, alpha=0.5, beta=0.5, smooth=1.0)
    assert jnp.allclose(out, ref, atol=1e-5, rtol=1e-5), (out, ref)

    print("KERNEL_OK")
</pallas_src>

<mosaic_0001>
module attributes {stable_mosaic.version = 11 : i64} {
  func.func @_tversky_sums_kernel(%arg0: i32, %arg1: i32, %arg2: memref<16x128xf32, #tpu.memory_space<vmem>>, %arg3: memref<16x128xf32, #tpu.memory_space<vmem>>, %arg4: memref<1x1x128xf32, #tpu.memory_space<vmem>>, %arg5: memref<1x1x128xf32, #tpu.memory_space<vmem>>, %arg6: memref<1x1x128xf32, #tpu.memory_space<vmem>>) attributes {dimension_semantics = [#tpu.dimension_semantics<parallel>, #tpu.dimension_semantics<arbitrary>], iteration_bounds = array<i64: 1, 1>, scalar_prefetch = 0 : i64, scratch_operands = 0 : i64, tpu.core_type = #tpu.core_type<tc>, window_params = [{transform_indices = @transform_0, window_bounds = array<i64: 16, 128>}, {transform_indices = @transform_1, window_bounds = array<i64: 16, 128>}, {transform_indices = @transform_2, window_bounds = array<i64: 1, 1, 128>}, {transform_indices = @transform_3, window_bounds = array<i64: 1, 1, 128>}, {transform_indices = @transform_4, window_bounds = array<i64: 1, 1, 128>}]} {
    %c0_i32 = arith.constant 0 : i32
    %0 = arith.cmpi eq, %arg1, %c0_i32 : i32
    %1 = arith.extui %0 : i1 to i32
    %c0_i32_0 = arith.constant 0 : i32
    %2 = arith.cmpi ne, %1, %c0_i32_0 : i32
    scf.if %2 {
      %cst_24 = arith.constant 0.000000e+00 : f32
      %21 = vector.broadcast %cst_24 : f32 to vector<1x1x128xf32>
      %c0_25 = arith.constant 0 : index
      %c0_26 = arith.constant 0 : index
      %c0_27 = arith.constant 0 : index
      %22 = vector.load %arg4[%c0_25, %c0_26, %c0_27] : memref<1x1x128xf32, #tpu.memory_space<vmem>>, vector<1x1x128xf32>
      tpu.vector_store %arg4[%c0_25, %c0_26, %c0_27], %21 {strides = array<i32>} : memref<1x1x128xf32, #tpu.memory_space<vmem>>, vector<1x1x128xf32>,
      %cst_28 = arith.constant 0.000000e+00 : f32
      %23 = vector.broadcast %cst_28 : f32 to vector<1x1x128xf32>
      %c0_29 = arith.constant 0 : index
      %c0_30 = arith.constant 0 : index
      %c0_31 = arith.constant 0 : index
      %24 = vector.load %arg5[%c0_29, %c0_30, %c0_31] : memref<1x1x128xf32, #tpu.memory_space<vmem>>, vector<1x1x128xf32>
      tpu.vector_store %arg5[%c0_29, %c0_30, %c0_31], %23 {strides = array<i32>} : memref<1x1x128xf32, #tpu.memory_space<vmem>>, vector<1x1x128xf32>,
      %cst_32 = arith.constant 0.000000e+00 : f32
      %25 = vector.broadcast %cst_32 : f32 to vector<1x1x128xf32>
      %c0_33 = arith.constant 0 : index
      %c0_34 = arith.constant 0 : index
      %c0_35 = arith.constant 0 : index
      %26 = vector.load %arg6[%c0_33, %c0_34, %c0_35] : memref<1x1x128xf32, #tpu.memory_space<vmem>>, vector<1x1x128xf32>
      tpu.vector_store %arg6[%c0_33, %c0_34, %c0_35], %25 {strides = array<i32>} : memref<1x1x128xf32, #tpu.memory_space<vmem>>, vector<1x1x128xf32>,
    } else {
    }
    %c0 = arith.constant 0 : index
    %c0_1 = arith.constant 0 : index
    %3 = vector.load %arg2[%c0, %c0_1] : memref<16x128xf32, #tpu.memory_space<vmem>>, vector<16x128xf32>
    %c0_2 = arith.constant 0 : index
    %c0_3 = arith.constant 0 : index
    %4 = vector.load %arg3[%c0_2, %c0_3] : memref<16x128xf32, #tpu.memory_space<vmem>>, vector<16x128xf32>
    %c0_4 = arith.constant 0 : index
    %c0_5 = arith.constant 0 : index
    %c0_6 = arith.constant 0 : index
    %5 = vector.load %arg4[%c0_4, %c0_5, %c0_6] : memref<1x1x128xf32, #tpu.memory_space<vmem>>, vector<1x1x128xf32>
    %6 = arith.mulf %3, %4 : vector<16x128xf32>
    %cst = arith.constant dense<0.000000e+00> : vector<128xf32>
    %7 = vector.multi_reduction <add>, %6, %cst [0] : vector<16x128xf32> to vector<128xf32>
    %8 = vector.shape_cast %7 : vector<128xf32> to vector<1x1x128xf32>
    %9 = arith.addf %5, %8 : vector<1x1x128xf32>
    %c0_7 = arith.constant 0 : index
    %c0_8 = arith.constant 0 : index
    %c0_9 = arith.constant 0 : index
    %10 = vector.load %arg4[%c0_7, %c0_8, %c0_9] : memref<1x1x128xf32, #tpu.memory_space<vmem>>, vector<1x1x128xf32>
    tpu.vector_store %arg4[%c0_7, %c0_8, %c0_9], %9 {strides = array<i32>} : memref<1x1x128xf32, #tpu.memory_space<vmem>>, vector<1x1x128xf32>,
    %c0_10 = arith.constant 0 : index
    %c0_11 = arith.constant 0 : index
    %c0_12 = arith.constant 0 : index
    %11 = vector.load %arg5[%c0_10, %c0_11, %c0_12] : memref<1x1x128xf32, #tpu.memory_space<vmem>>, vector<1x1x128xf32>
    %cst_13 = arith.constant dense<0.000000e+00> : vector<128xf32>
    %12 = vector.multi_reduction <add>, %3, %cst_13 [0] : vector<16x128xf32> to vector<128xf32>
    %13 = vector.shape_cast %12 : vector<128xf32> to vector<1x1x128xf32>
    %14 = arith.addf %11, %13 : vector<1x1x128xf32>
    %c0_14 = arith.constant 0 : index
    %c0_15 = arith.constant 0 : index
    %c0_16 = arith.constant 0 : index
    %15 = vector.load %arg5[%c0_14, %c0_15, %c0_16] : memref<1x1x128xf32, #tpu.memory_space<vmem>>, vector<1x1x128xf32>
    tpu.vector_store %arg5[%c0_14, %c0_15, %c0_16], %14 {strides = array<i32>} : memref<1x1x128xf32, #tpu.memory_space<vmem>>, vector<1x1x128xf32>,
    %c0_17 = arith.constant 0 : index
    %c0_18 = arith.constant 0 : index
    %c0_19 = arith.constant 0 : index
    %16 = vector.load %arg6[%c0_17, %c0_18, %c0_19] : memref<1x1x128xf32, #tpu.memory_space<vmem>>, vector<1x1x128xf32>
    %cst_20 = arith.constant dense<0.000000e+00> : vector<128xf32>
    %17 = vector.multi_reduction <add>, %4, %cst_20 [0] : vector<16x128xf32> to vector<128xf32>
    %18 = vector.shape_cast %17 : vector<128xf32> to vector<1x1x128xf32>
    %19 = arith.addf %16, %18 : vector<1x1x128xf32>
    %c0_21 = arith.constant 0 : index
    %c0_22 = arith.constant 0 : index
    %c0_23 = arith.constant 0 : index
    %20 = vector.load %arg6[%c0_21, %c0_22, %c0_23] : memref<1x1x128xf32, #tpu.memory_space<vmem>>, vector<1x1x128xf32>
    tpu.vector_store %arg6[%c0_21, %c0_22, %c0_23], %19 {strides = array<i32>} : memref<1x1x128xf32, #tpu.memory_space<vmem>>, vector<1x1x128xf32>,
    return
  }
  func.func @transform_0(%arg0: i32, %arg1: i32) -> (i32, i32) {
    %c1_i32 = arith.constant 1 : i32
    %0 = arith.muli %arg0, %c1_i32 : i32
    %1 = arith.addi %0, %arg1 : i32
    %c0_i32 = arith.constant 0 : i32
    %c0_i32_0 = arith.constant 0 : i32
    return %1, %c0_i32 : i32, i32
  }
  func.func @transform_1(%arg0: i32, %arg1: i32) -> (i32, i32) {
    %c1_i32 = arith.constant 1 : i32
    %0 = arith.muli %arg0, %c1_i32 : i32
    %1 = arith.addi %0, %arg1 : i32
    %c0_i32 = arith.constant 0 : i32
    %c0_i32_0 = arith.constant 0 : i32
    return %1, %c0_i32 : i32, i32
  }
  func.func @transform_2(%arg0: i32, %arg1: i32) -> (i32, i32, i32) {
    %c0_i32 = arith.constant 0 : i32
    %c0_i32_0 = arith.constant 0 : i32
    %c0_i32_1 = arith.constant 0 : i32
    return %arg0, %c0_i32, %c0_i32_0 : i32, i32, i32
  }
  func.func @transform_3(%arg0: i32, %arg1: i32) -> (i32, i32, i32) {
    %c0_i32 = arith.constant 0 : i32
    %c0_i32_0 = arith.constant 0 : i32
    %c0_i32_1 = arith.constant 0 : i32
    return %arg0, %c0_i32, %c0_i32_0 : i32, i32, i32
  }
  func.func @transform_4(%arg0: i32, %arg1: i32) -> (i32, i32, i32) {
    %c0_i32 = arith.constant 0 : i32
    %c0_i32_0 = arith.constant 0 : i32
    %c0_i32_1 = arith.constant 0 : i32
    return %arg0, %c0_i32, %c0_i32_0 : i32, i32, i32
  }
}

</mosaic_0001>

<bundles_post_ra>
// kernel: tpu_custom_call.1
= control target key start
LH: loop header
LB: loop body
LE: loop exit
PB: predicated region body
PF: predicated region fallthrough
CT: control target
= control target key end

     0   :  { %10 = vsyncpa [#allocation3], 0  ;;  %s336_s0 = inlined_call_operand.hbm [shape: f32[16,128], index: 0, kind: input, shape index: {}]   ;;  %s337_s1 = inlined_call_operand.hbm [shape: f32[16,128], index: 1, kind: input, shape index: {}]   ;;  %s338_s2 = inlined_call_operand.hbm [shape: f32[1,1,128], index: 2, kind: output, shape index: {0}]   ;;  %s339_s3 = inlined_call_operand.hbm [shape: f32[1,1,128], index: 3, kind: output, shape index: {1}]   ;;  %s340_s4 = inlined_call_operand.hbm [shape: f32[1,1,128], index: 4, kind: output, shape index: {2}]  }
   0x1   :  { %11 = vsyncpa [#allocation6], 0 }
   0x2   :  { %12 = vsyncpa [#allocation4], 0 }
   0x3   :  { %13 = vsyncpa [#allocation9], 0  ;;  %s22_s17 = sshll.u32 %s336_s0, 4  ;;  %s288_s18 = smov [#allocation2]   ;;  %s23_s17 = int_to_ptr.hbm [resolvable:$true] %s22_s17 }
   0x4   :  { %s24_s19 = sshll.u32 %s288_s18, 4  ;;  %s39_s22 = sshll.u32 %s337_s1, 4  ;;  %s25_s19 = int_to_ptr.vmem [resolvable:$true] %s24_s19  ;;  %s40_s22 = int_to_ptr.hbm [resolvable:$true] %s39_s22 }
   0x5   :  { %s289_s23 = smov 128   ;;  %s290_s24 = smov 8  }
   0x6   :  { %30 = dma.hbm_to_vmem [thread:$0]  %s23_s17, 256, %s25_s19, [#allocation3], %s289_s23, %s289_s23, %s290_s24  }
   0x7   :  { %s291_s25 = smov [#allocation5]  }
   0x8   :  { %s41_s26 = sshll.u32 %s291_s25, 4  ;;  %s42_s26 = int_to_ptr.vmem [resolvable:$true] %s41_s26 }
   0x9   :  { %47 = dma.hbm_to_vmem [thread:$0]  %s40_s22, 256, %s42_s26, [#allocation6], %s289_s23, %s289_s23, %s290_s24  }
   0xa   :  { %280 = dma.done.wait [#allocation3], 256  }
   0xb   :  { %281 = vsyncadd [#allocation3], 4294967040 }
   0xc   :  { %282 = dma.done.wait [#allocation6], 256  }
   0xd   :  { %283 = vsyncadd [#allocation6], 4294967040  ;;  %v292_v0 = vmov 0.0   ;;  %v67_v1 = vld [vmem:[#allocation2] sm:$0xff]  ;;  %v68_v2 = vld [vmem:[#allocation2 + $0x8] sm:$0xff]  ;;  %s293_s0 = smov [#allocation8]  }
   0xe   :  { %65 = vst [vmem:[#allocation8] sm:$0x1] %v292_v0  ;;  %v69_v3 = vld [vmem:[#allocation5] sm:$0xff]  ;;  %v84_v4 = vadd.f32 %v68_v2, %v67_v1  ;;  %v70_v5 = vld [vmem:[#allocation5 + $0x8] sm:$0xff]  ;;  %s119_s1 = sshll.u32 %s293_s0, 4  ;;  %s121_s29 = sshll.u32 %s339_s3, 4  ;;  %s120_s1 = int_to_ptr.vmem [resolvable:$true] %s119_s1  ;;  %s122_s29 = int_to_ptr.hbm [resolvable:$true] %s121_s29 }
   0xf   :  { %64 = vst [vmem:[#allocation7] sm:$0x1] %v292_v0  ;;  %v72_v6 = vmul.f32 %v69_v3, %v67_v1  ;;  %v73_v7 = vmul.f32 %v70_v5, %v68_v2  ;;  %v94_v8 = vadd.f32 %v70_v5, %v69_v3  ;;  %s294_s30 = smov [#allocation10]   ;;  %s132_s8 = sshll.u32 %s340_s4, 4  ;;  %s133_s8 = int_to_ptr.hbm [resolvable:$true] %s132_s8 }
  0x10   :  { %66 = vst [vmem:[#allocation10] sm:$0x1] %v292_v0  ;;  %v85_v9 = vrot.slane %v84_v4, 4  ;;  %s130_s5 = sshll.u32 %s294_s30, 4  ;;  %s295_s9 = smov [#allocation7]   ;;  %s131_s5 = int_to_ptr.vmem [resolvable:$true] %s130_s5 }
  0x11   :  { %v74_v10 = vadd.f32 %v73_v7, %v72_v6  ;;  %v95_v11 = vrot.slane %v94_v8, 4  ;;  %s108_s10 = sshll.u32 %s295_s9, 4  ;;  %s110_s13 = sshll.u32 %s338_s2, 4  ;;  %s109_s10 = int_to_ptr.vmem [resolvable:$true] %s108_s10  ;;  %s111_s13 = int_to_ptr.hbm [resolvable:$true] %s110_s13 }
  0x12   :  { %v86_v12 = vadd.f32 %v85_v9, %v84_v4 }
  0x13   :  { %v75_v13 = vrot.slane %v74_v10, 4  ;;  %v96_v14 = vadd.f32 %v95_v11, %v94_v8 }
  0x14   :  { %v87_v15 = vrot.slane %v86_v12, 2 }
  0x15   :  { %v76_v16 = vadd.f32 %v75_v13, %v74_v10  ;;  %v97_v17 = vrot.slane %v96_v14, 2  ;;  %v83_v22 = vld [vmem:[#allocation8] sm:$0x1] }
  0x16   :  { %v88_v18 = vadd.f32 %v87_v15, %v86_v12  ;;  %v71_v30 = vld [vmem:[#allocation7] sm:$0x1] }
  0x17   :  { %v77_v19 = vrot.slane %v76_v16, 2  ;;  %v98_v20 = vadd.f32 %v97_v17, %v96_v14  ;;  %v93_v26 = vld [vmem:[#allocation10] sm:$0x1] }
  0x18   :  { %v89_v21 = vrot.slane %v88_v18, 1 }
  0x19   :  { %v78_v23 = vadd.f32 %v77_v19, %v76_v16  ;;  %v99_v24 = vrot.slane %v98_v20, 1 }
  0x1a   :  { %v90_v25 = vadd.f32 %v89_v21, %v88_v18 }
  0x1b   :  { %v79_v27 = vrot.slane %v78_v23, 1  ;;  %v100_v28 = vadd.f32 %v99_v24, %v98_v20 }
  0x1c   :  { %v91_v29 = vadd.f32 %v90_v25, %v83_v22 }
  0x1d   :  { %v80_v31 = vadd.f32 %v79_v27, %v78_v23  ;;  %v101_v32 = vadd.f32 %v100_v28, %v93_v26 }
  0x1e   :  { %92 = vst [vmem:[#allocation8] sm:$0x1] %v91_v29 }
  0x1f   :  { %v81_v33 = vadd.f32 %v80_v31, %v71_v30  ;;  %102 = vst [vmem:[#allocation10] sm:$0x1] %v101_v32  ;;  %124 = dma.vmem_to_hbm [thread:$0]  %s120_s1, 16, %s122_s29, [#allocation9]  }
  0x20   :  { %135 = dma.vmem_to_hbm [thread:$0]  %s131_s5, 16, %s133_s8, [#allocation9]  }
  0x21   :  { %82 = vst [vmem:[#allocation7] sm:$0x1] %v81_v33 }
  0x22   :  { %113 = dma.vmem_to_hbm [thread:$0]  %s109_s10, 16, %s111_s13, [#allocation4]  }
  0x23   :  { %284 = dma.done.wait [#allocation4], 16  }
  0x24   :  { %285 = vsyncadd [#allocation4], 4294967280 }
  0x25   :  { %286 = dma.done.wait [#allocation9], 32  }
  0x26   :  { %287 = vsyncadd [#allocation9], 4294967264 }
  0x27   :  { %148 = vsyncpa [#allocation3], 1 }
  0x28   :  { %149 = vsyncpa [#allocation6], 1 }
  0x29   :  { %150 = vsyncpa [#allocation4], 1 }
  0x2a   :  { %151 = vsyncpa [#allocation9], 1 }

</bundles_post_ra>
